<compile_context>
chip_gen: v6e
topology: v6e:2x2x1
jax: 0.10.0
libtpu: 0.0.40
codegen_flags: <defaults>
</compile_context>

<pallas_src>
import functools

import jax
import jax.numpy as jnp
from jax.experimental import pallas as pl
from jax.experimental.pallas import tpu as pltpu


def _round_up(x: int, m: int) -> int:
    return ((x + m - 1) // m) * m


def _choose_tiling(B: int, block_b: int):
    """Pick (TB, num_tiles).  TB is a multiple of 128; >=2 tiles whenever
    B > 128 so both v7x TensorCores get work ("parallel" grid axis)."""
    B128 = _round_up(B, 128)
    if B128 <= 128:
        return 128, 1                                   # tiny batch: 1 tile
    TB = max(128, min(_round_up(block_b, 128), B128))
    if pl.cdiv(B128, TB) < 2:                           # guarantee >=2 grid points
        TB = _round_up(pl.cdiv(B128, 2), 128)
    return TB, int(pl.cdiv(B, TB))


def _value_mlp_kernel(x_ref, w1_ref, b1_ref, w2_ref, b2_ref, w3_ref, b3_ref,
                      o_ref, *, mm_dtype):
    # Cast the f32 state tile to the matmul dtype on the VPU (free relative to
    # MXU work; avoids a separate wrapper-side XLA cast pass over HBM).
    x = x_ref[...].astype(mm_dtype)

    # Layer 1: (TB, D) @ (D, H) on the MXU (f32 accumulate); bias/ReLU on VPU.
    h1 = jnp.dot(x, w1_ref[...], preferred_element_type=jnp.float32)
    h1 = jnp.maximum(h1 + b1_ref[...], 0.0)

    # Layer 2: (TB, H) @ (H, H) on the MXU.
    h2 = jnp.dot(h1.astype(mm_dtype), w2_ref[...],
                 preferred_element_type=jnp.float32)
    h2 = jnp.maximum(h2 + b2_ref[...], 0.0)

    # Layer 3 (H -> 1): VPU multiply + lane reduction instead of a degenerate
    # (H, 1) MXU matmul.  Result is produced directly in the lane-dense
    # (rows, 128) layout of the output block so stores are full-width.
    rows, lanes = o_ref.shape[1], o_ref.shape[2]        # rows * lanes == TB
    h2r = h2.reshape(rows, lanes, h2.shape[-1])         # split of batch dim only
    val = jnp.sum(h2r * w3_ref[...], axis=-1)           # (rows, lanes), f32
    o_ref[0] = val + b3_ref[...]                        # (1,1) bias broadcasts


def prepare_value_function_params(params, *, use_bf16: bool = True):
    """One-time parameter prep (hoisted out of the per-call wrapper): zero-pad
    the hidden dim to a multiple of 128 (exact math), reshape w3 to a row, and
    cast the MXU operands (W1, W2) to bf16."""
    w1, b1, w2, b2, w3, b3 = params
    H = w1.shape[1]
    H_pad = _round_up(H, 128)
    if H_pad != H:
        w1 = jnp.pad(w1, ((0, 0), (0, H_pad - H)))
        b1 = jnp.pad(b1, ((0, 0), (0, H_pad - H)))
        w2 = jnp.pad(w2, ((0, H_pad - H), (0, H_pad - H)))
        b2 = jnp.pad(b2, ((0, 0), (0, H_pad - H)))
        w3 = jnp.pad(w3, ((0, H_pad - H), (0, 0)))
    mm_dtype = jnp.bfloat16 if use_bf16 else jnp.float32
    w3_row = w3.reshape(1, H_pad).astype(jnp.float32)   # (H,1) -> (1,H), same order
    return (w1.astype(mm_dtype), b1.astype(jnp.float32),
            w2.astype(mm_dtype), b2.astype(jnp.float32),
            w3_row, b3.astype(jnp.float32))


def value_function_forward(state, prepared_params, *, block_b: int = 4096):
    """state: (B, state_dim) float32 -> (B,) float32.
    `prepared_params` must come from prepare_value_function_params()."""
    w1, b1, w2, b2, w3_row, b3 = prepared_params
    B, D = state.shape
    H_pad = w1.shape[1]
    if H_pad % 128 != 0 or w3_row.ndim != 2 or w3_row.shape[0] != 1:
        raise ValueError("pass params through prepare_value_function_params() first")
    mm_dtype = w1.dtype
    w_itemsize = jnp.dtype(mm_dtype).itemsize

    TB, num_tiles = _choose_tiling(B, block_b)
    out_rows = TB // 128
    B_work = num_tiles * TB

    # VMEM budget: double-buffered state / output tiles + weights + the f32
    # h1/h2 intermediates + in-kernel low-precision copies.  Floor at 32 MiB
    # (safe on all generations), cap at 48 MiB (under v7x's 64 MiB physical).
    vmem_bytes = (
        2 * TB * D * 4                                   # state tile, double-buffered
        + 2 * out_rows * 128 * 4                         # output tile, double-buffered
        + 2 * ((D + H_pad) * H_pad * w_itemsize          # W1 + W2 (default 2 buffers)
               + (3 * H_pad + 1) * 4)                    # b1, b2, w3_row, b3
        + 2 * TB * H_pad * 4                             # h1 / h2 f32 intermediates
        + TB * (D + H_pad) * w_itemsize                  # in-kernel casts of x / h1
    )
    vmem_limit = min(max(int(1.25 * vmem_bytes) + (1 << 20), 32 << 20), 48 << 20)

    cost = pl.CostEstimate(
        flops=2 * B_work * (D * H_pad + H_pad * H_pad + H_pad),
        transcendentals=0,
        bytes_accessed=(B * D * 4                                   # state (f32)
                        + (D + H_pad) * H_pad * w_itemsize          # W1, W2
                        + (3 * H_pad + 1) * 4                       # b1, b2, w3, b3
                        + B_work * 4),                              # output
    )

    out = pl.pallas_call(
        functools.partial(_value_mlp_kernel, mm_dtype=mm_dtype),
        out_shape=jax.ShapeDtypeStruct((num_tiles, out_rows, 128), jnp.float32),
        grid_spec=pltpu.PrefetchScalarGridSpec(
            num_scalar_prefetch=0,
            grid=(num_tiles,),
            in_specs=[
                pl.BlockSpec((TB, D), lambda i: (i, 0)),            # state tile (pipelined; last one ragged)
                pl.BlockSpec((D, H_pad), lambda i: (0, 0)),         # W1  (VMEM-resident)
                pl.BlockSpec((1, H_pad), lambda i: (0, 0)),         # b1
                pl.BlockSpec((H_pad, H_pad), lambda i: (0, 0)),     # W2
                pl.BlockSpec((1, H_pad), lambda i: (0, 0)),         # b2
                pl.BlockSpec((1, H_pad), lambda i: (0, 0)),         # W3 row
                pl.BlockSpec((1, 1), lambda i: (0, 0)),             # b3
            ],
            out_specs=pl.BlockSpec((1, out_rows, 128), lambda i: (i, 0, 0)),
        ),
        compiler_params=pltpu.CompilerParams(
            dimension_semantics=("parallel",),
            vmem_limit_bytes=vmem_limit,
        ),
        cost_estimate=cost,
    )(state, w1, b1, w2, b2, w3_row, b3)

    # Squeeze(-1): flatten lane-dense blocks back to (B,).  Rows past B (ragged
    # last tile / 128-row round-up) are independent garbage and dropped here.
    return out.reshape(-1)[:B]


def init_value_function_params(key, state_dim, hidden_dim=256, n_hidden=2):
    """Deterministic synthetic init; weights stored (in, out), biases (1, out)."""
    assert n_hidden == 2, "this script mirrors the default n_hidden=2"
    k1, k2, k3 = jax.random.split(key, 3)
    scale = 0.05
    w1 = scale * jax.random.normal(k1, (state_dim, hidden_dim), jnp.float32)
    b1 = jnp.zeros((1, hidden_dim), jnp.float32)
    w2 = scale * jax.random.normal(k2, (hidden_dim, hidden_dim), jnp.float32)
    b2 = jnp.zeros((1, hidden_dim), jnp.float32)
    w3 = scale * jax.random.normal(k3, (hidden_dim, 1), jnp.float32)
    b3 = jnp.zeros((1, 1), jnp.float32)
    return (w1, b1, w2, b2, w3, b3)


def _reference_forward(state, params, use_bf16=True):
    """Pure-JAX reference mirroring the kernel's matmul dtype / f32 accumulate."""
    w1, b1, w2, b2, w3, b3 = params
    dt = jnp.bfloat16 if use_bf16 else jnp.float32
    h1 = jnp.maximum(
        jnp.dot(state.astype(dt), w1.astype(dt),
                preferred_element_type=jnp.float32) + b1, 0.0)
    h2 = jnp.maximum(
        jnp.dot(h1.astype(dt), w2.astype(dt),
                preferred_element_type=jnp.float32) + b2, 0.0)
    return jnp.sum(h2 * w3.reshape(1, -1), axis=-1) + b3[0, 0]


if __name__ == "__main__":
    B, STATE_DIM, HIDDEN = 8, 32, 64  # small shapes consistent with the module

    key = jax.random.PRNGKey(0)
    k_state, k_params, k_state2 = jax.random.split(key, 3)
    state = jax.random.normal(k_state, (B, STATE_DIM), jnp.float32)
    raw_params = init_value_function_params(k_params, STATE_DIM,
                                            hidden_dim=HIDDEN, n_hidden=2)

    # One-time parameter prep (pad hidden dim to 128, cast MXU operands to bf16).
    params_bf16 = prepare_value_function_params(raw_params, use_bf16=True)

    # 1) Small batch, single tile.
    out = jax.block_until_ready(value_function_forward(state, params_bf16))
    ref = _reference_forward(state, raw_params, use_bf16=True)
    assert out.shape == (B,), out.shape
    assert jnp.allclose(out, ref, atol=1e-3, rtol=1e-3), (out, ref)

    # 2) Medium batch: >=2 grid tiles (v7x megacore) with a ragged last tile
    #    (no wrapper-side jnp.pad of the state).
    B2 = 300
    state2 = jax.random.normal(k_state2, (B2, STATE_DIM), jnp.float32)
    out2 = jax.block_until_ready(value_function_forward(state2, params_bf16))
    ref2 = _reference_forward(state2, raw_params, use_bf16=True)
    assert out2.shape == (B2,), out2.shape
    assert jnp.allclose(out2, ref2, atol=1e-3, rtol=1e-3), (out2, ref2)

    # 3) f32 path (closer parity with the f32 PyTorch module; loose tolerance
    #    since MXU f32 precision modes may differ slightly from the XLA dot).
    params_f32 = prepare_value_function_params(raw_params, use_bf16=False)
    out3 = jax.block_until_ready(value_function_forward(state, params_f32))
    ref3 = _reference_forward(state, raw_params, use_bf16=False)
    assert out3.shape == (B,), out3.shape
    assert jnp.allclose(out3, ref3, atol=1e-2, rtol=1e-2), (out3, ref3)

    print("KERNEL_OK")
</pallas_src>

<mosaic_0001>
module attributes {stable_mosaic.version = 11 : i64} {
  func.func @_value_mlp_kernel(%arg0: i32, %arg1: memref<128x32xf32, #tpu.memory_space<vmem>>, %arg2: memref<32x128xbf16, #tpu.memory_space<vmem>>, %arg3: memref<1x128xf32, #tpu.memory_space<vmem>>, %arg4: memref<128x128xbf16, #tpu.memory_space<vmem>>, %arg5: memref<1x128xf32, #tpu.memory_space<vmem>>, %arg6: memref<1x128xf32, #tpu.memory_space<vmem>>, %arg7: memref<1x1xf32, #tpu.memory_space<vmem>>, %arg8: memref<1x1x128xf32, #tpu.memory_space<vmem>>) attributes {dimension_semantics = [#tpu.dimension_semantics<parallel>], iteration_bounds = array<i64: 1>, scalar_prefetch = 0 : i64, scratch_operands = 0 : i64, tpu.core_type = #tpu.core_type<tc>, window_params = [{transform_indices = @transform_0, window_bounds = array<i64: 128, 32>}, {pipeline_mode = #tpu.pipeline_mode<synchronous>, transform_indices = @transform_1, window_bounds = array<i64: 32, 128>}, {pipeline_mode = #tpu.pipeline_mode<synchronous>, transform_indices = @transform_2, window_bounds = array<i64: 1, 128>}, {pipeline_mode = #tpu.pipeline_mode<synchronous>, transform_indices = @transform_3, window_bounds = array<i64: 128, 128>}, {pipeline_mode = #tpu.pipeline_mode<synchronous>, transform_indices = @transform_4, window_bounds = array<i64: 1, 128>}, {pipeline_mode = #tpu.pipeline_mode<synchronous>, transform_indices = @transform_5, window_bounds = array<i64: 1, 128>}, {pipeline_mode = #tpu.pipeline_mode<synchronous>, transform_indices = @transform_6, window_bounds = array<i64: 1, 1>}, {transform_indices = @transform_7, window_bounds = array<i64: 1, 1, 128>}]} {
    %c0 = arith.constant 0 : index
    %c0_0 = arith.constant 0 : index
    %0 = vector.load %arg1[%c0, %c0_0] : memref<128x32xf32, #tpu.memory_space<vmem>>, vector<128x32xf32>
    %1 = arith.truncf %0 : vector<128x32xf32> to vector<128x32xbf16>
    %c0_1 = arith.constant 0 : index
    %c0_2 = arith.constant 0 : index
    %2 = vector.load %arg2[%c0_1, %c0_2] : memref<32x128xbf16, #tpu.memory_space<vmem>>, vector<32x128xbf16>
    %cst = arith.constant dense<0.000000e+00> : vector<128x128xf32>
    %3 = tpu.matmul %1, %2, %cst {dimension_numbers = #tpu.dot_dimension_numbers<[1], [0], [0], [1], [0, 0, 1, 1], [], []>} : vector<128x32xbf16>, vector<32x128xbf16>, vector<128x128xf32> -> vector<128x128xf32>
    %c0_3 = arith.constant 0 : index
    %c0_4 = arith.constant 0 : index
    %4 = vector.load %arg3[%c0_3, %c0_4] : memref<1x128xf32, #tpu.memory_space<vmem>>, vector<1x128xf32>
    %5 = vector.broadcast %4 : vector<1x128xf32> to vector<128x128xf32>
    %6 = arith.addf %3, %5 : vector<128x128xf32>
    %cst_5 = arith.constant 0.000000e+00 : f32
    %7 = vector.broadcast %cst_5 : f32 to vector<128x128xf32>
    %8 = arith.maximumf %6, %7 : vector<128x128xf32>
    %9 = arith.truncf %8 : vector<128x128xf32> to vector<128x128xbf16>
    %c0_6 = arith.constant 0 : index
    %c0_7 = arith.constant 0 : index
    %10 = vector.load %arg4[%c0_6, %c0_7] : memref<128x128xbf16, #tpu.memory_space<vmem>>, vector<128x128xbf16>
    %cst_8 = arith.constant dense<0.000000e+00> : vector<128x128xf32>
    %11 = tpu.matmul %9, %10, %cst_8 {dimension_numbers = #tpu.dot_dimension_numbers<[1], [0], [0], [1], [0, 0, 1, 1], [], []>} : vector<128x128xbf16>, vector<128x128xbf16>, vector<128x128xf32> -> vector<128x128xf32>
    %c0_9 = arith.constant 0 : index
    %c0_10 = arith.constant 0 : index
    %12 = vector.load %arg5[%c0_9, %c0_10] : memref<1x128xf32, #tpu.memory_space<vmem>>, vector<1x128xf32>
    %13 = vector.broadcast %12 : vector<1x128xf32> to vector<128x128xf32>
    %14 = arith.addf %11, %13 : vector<128x128xf32>
    %cst_11 = arith.constant 0.000000e+00 : f32
    %15 = vector.broadcast %cst_11 : f32 to vector<128x128xf32>
    %16 = arith.maximumf %14, %15 : vector<128x128xf32>
    %17 = vector.shape_cast %16 : vector<128x128xf32> to vector<1x128x128xf32>
    %c0_12 = arith.constant 0 : index
    %c0_13 = arith.constant 0 : index
    %18 = vector.load %arg6[%c0_12, %c0_13] : memref<1x128xf32, #tpu.memory_space<vmem>>, vector<1x128xf32>
    %19 = vector.shape_cast %18 : vector<1x128xf32> to vector<1x1x128xf32>
    %20 = vector.broadcast %19 : vector<1x1x128xf32> to vector<1x128x128xf32>
    %21 = arith.mulf %17, %20 : vector<1x128x128xf32>
    %cst_14 = arith.constant dense<0.000000e+00> : vector<1x128xf32>
    %22 = vector.multi_reduction <add>, %21, %cst_14 [2] : vector<1x128x128xf32> to vector<1x128xf32>
    %c0_15 = arith.constant 0 : index
    %c0_16 = arith.constant 0 : index
    %23 = vector.load %arg7[%c0_15, %c0_16] : memref<1x1xf32, #tpu.memory_space<vmem>>, vector<1x1xf32>
    %24 = vector.broadcast %23 : vector<1x1xf32> to vector<1x128xf32>
    %25 = arith.addf %22, %24 : vector<1x128xf32>
    %c0_17 = arith.constant 0 : index
    %c0_18 = arith.constant 0 : index
    %c0_19 = arith.constant 0 : index
    %26 = vector.load %arg8[%c0_17, %c0_18, %c0_19] : memref<1x1x128xf32, #tpu.memory_space<vmem>>, vector<1x1x128xf32>
    %27 = vector.shape_cast %26 : vector<1x1x128xf32> to vector<1x128xf32>
    %28 = vector.shape_cast %25 : vector<1x128xf32> to vector<1x1x128xf32>
    tpu.vector_store %arg8[%c0_17, %c0_18, %c0_19], %28 {strides = array<i32>} : memref<1x1x128xf32, #tpu.memory_space<vmem>>, vector<1x1x128xf32>,
    return
  }
  func.func @transform_0(%arg0: i32) -> (i32, i32) {
    %c0_i32 = arith.constant 0 : i32
    %c0_i32_0 = arith.constant 0 : i32
    return %arg0, %c0_i32 : i32, i32
  }
  func.func @transform_1(%arg0: i32) -> (i32, i32) {
    %c0_i32 = arith.constant 0 : i32
    %c0_i32_0 = arith.constant 0 : i32
    %c0_i32_1 = arith.constant 0 : i32
    return %c0_i32, %c0_i32_0 : i32, i32
  }
  func.func @transform_2(%arg0: i32) -> (i32, i32) {
    %c0_i32 = arith.constant 0 : i32
    %c0_i32_0 = arith.constant 0 : i32
    %c0_i32_1 = arith.constant 0 : i32
    return %c0_i32, %c0_i32_0 : i32, i32
  }
  func.func @transform_3(%arg0: i32) -> (i32, i32) {
    %c0_i32 = arith.constant 0 : i32
    %c0_i32_0 = arith.constant 0 : i32
    %c0_i32_1 = arith.constant 0 : i32
    return %c0_i32, %c0_i32_0 : i32, i32
  }
  func.func @transform_4(%arg0: i32) -> (i32, i32) {
    %c0_i32 = arith.constant 0 : i32
    %c0_i32_0 = arith.constant 0 : i32
    %c0_i32_1 = arith.constant 0 : i32
    return %c0_i32, %c0_i32_0 : i32, i32
  }
  func.func @transform_5(%arg0: i32) -> (i32, i32) {
    %c0_i32 = arith.constant 0 : i32
    %c0_i32_0 = arith.constant 0 : i32
    %c0_i32_1 = arith.constant 0 : i32
    return %c0_i32, %c0_i32_0 : i32, i32
  }
  func.func @transform_6(%arg0: i32) -> (i32, i32) {
    %c0_i32 = arith.constant 0 : i32
    %c0_i32_0 = arith.constant 0 : i32
    %c0_i32_1 = arith.constant 0 : i32
    return %c0_i32, %c0_i32_0 : i32, i32
  }
  func.func @transform_7(%arg0: i32) -> (i32, i32, i32) {
    %c0_i32 = arith.constant 0 : i32
    %c0_i32_0 = arith.constant 0 : i32
    %c0_i32_1 = arith.constant 0 : i32
    return %arg0, %c0_i32, %c0_i32_0 : i32, i32, i32
  }
}

</mosaic_0001>

<bundles_post_ra>
// kernel: tpu_custom_call.1
= control target key start
LH: loop header
LB: loop body
LE: loop exit
PB: predicated region body
PF: predicated region fallthrough
CT: control target
= control target key end

     0   :  { %s1077_s0 = inlined_call_operand.hbm [shape: f32[8,32], index: 0, kind: input, shape index: {}]   ;;  %s1078_s1 = inlined_call_operand.hbm [shape: bf16[32,128], index: 1, kind: input, shape index: {}]   ;;  %s1079_s2 = inlined_call_operand.vmem [shape: f32[1,128], index: 2, kind: input, shape index: {}]   ;;  %s1080_s3 = inlined_call_operand.hbm [shape: bf16[128,128], index: 3, kind: input, shape index: {}]   ;;  %s1081_s4 = inlined_call_operand.vmem [shape: f32[1,128], index: 4, kind: input, shape index: {}]   ;;  %s1082_s5 = inlined_call_operand.vmem [shape: f32[1,128], index: 5, kind: input, shape index: {}]   ;;  %s1083_s6 = inlined_call_operand.<no memory space> [shape: f32[1,1], index: 6, kind: input, shape index: {}]   ;;  %s1084_s7 = inlined_call_operand.hbm [shape: f32[1,1,128], index: 7, kind: output, shape index: {}]  }
   0x1   :  { %v12_v0 = vstv %s1083_s6 }
   0x2   :  { %13 = vst [vmem:[#allocation2] sm:$0x1] %v12_v0 }
   0x3   :  { %14 = vsyncpa [#allocation4], 0 }
   0x4   :  { %15 = vsyncpa [#allocation7], 0 }
   0x5   :  { %16 = vsyncpa [#allocation5], 0 }
   0x6   :  { %21 = vsyncadd [#allocation4], 1920  ;;  %s896_s26 = smov [#allocation6]  }
   0x7   :  { %s34_s27 = sshll.u32 %s896_s26, 4  ;;  %s35_s27 = int_to_ptr.vmem [resolvable:$true] %s34_s27 }
   0x8   :  { %s818_s28 = scalar_lea.vmem %s35_s27, 256  ;;  %p823_p1 = scmp.lt.s32.totalorder %s35_s27, %s35_s27 }
   0x9   :  { %p819_p0 = scmp.ne.s32.totalorder %s35_s27, %s818_s28  ;;  %p824_p2 = scmp.lt.s32.totalorder %s818_s28, %s818_s28 }
   0xb   :  { %p825_p3 = por %p824_p2, %p823_p1 }
   0xd   :  { %p826_p4 = pnand %p825_p3, %p819_p0 }
   0xf   :  { %829 = shalt.err (!%p826_p4)
}
  0x10   :  { %s897_s29 = smov 64   ;;  %s898_s30 = smov 4  }
  0x11   :  { %40 = dma.hbm_to_vmem [thread:$0]  %s1078_s1, 256, %s35_s27, [#allocation7], %s897_s29, %s897_s29, %s898_s30  }
  0x12   :  { %s899_s9 = smov [#allocation3]  }
  0x13   :  { %s22_s10 = sshll.u32 %s899_s9, 4  ;;  %s23_s10 = int_to_ptr.vmem [resolvable:$true] %s22_s10 }
  0x14   :  { %s838_s11 = scalar_lea.vmem %s23_s10, 128  ;;  %s842_s12 = scalar_lea.vmem %s23_s10, 2048 }
  0x15   :  { %p839_p5 = scmp.ne.s32.totalorder %s23_s10, %s838_s11  ;;  %p843_p6 = scmp.lt.s32.totalorder %s23_s10, %s23_s10 }
  0x16   :  { %p844_p7 = scmp.lt.s32.totalorder %s842_s12, %s838_s11 }
  0x18   :  { %p845_p8 = por %p844_p7, %p843_p6 }
  0x1a   :  { %p846_p9 = pnand %p845_p8, %p839_p5 }
  0x1c   :  { %849 = shalt.err (!%p846_p9)
}
  0x1d   :  { %s900_s13 = smov 128   ;;  %s901_s14 = smov 8  }
  0x1e   :  { %28 = dma.hbm_to_vmem [thread:$0]  %s1077_s0, 128, %s23_s10, [#allocation4], %s900_s13, %s900_s13, %s901_s14  }
  0x1f   :  { %s902_s17 = smov [#allocation8]  }
  0x20   :  { %s48_s18 = sshll.u32 %s902_s17, 4  ;;  %s49_s18 = int_to_ptr.vmem [resolvable:$true] %s48_s18 }
  0x21   :  { %s858_s1 = scalar_lea.vmem %s49_s18, 1024  ;;  %p863_p11 = scmp.lt.s32.totalorder %s49_s18, %s49_s18 }
  0x22   :  { %p859_p10 = scmp.ne.s32.totalorder %s49_s18, %s858_s1  ;;  %p864_p12 = scmp.lt.s32.totalorder %s858_s1, %s858_s1 }
  0x24   :  { %p865_p13 = por %p864_p12, %p863_p11 }
  0x26   :  { %p866_p0 = pnand %p865_p13, %p859_p10 }
  0x28   :  { %869 = shalt.err (!%p866_p0)
}
  0x29   :  { %54 = dma.hbm_to_vmem [thread:$0]  %s1080_s3, 1024, %s49_s18, [#allocation7], %s897_s29, %s897_s29, %s898_s30  }
  0x2a   :  { %890 = dma.done.wait [#allocation4], 2048  }
  0x2b   :  { %891 = vsyncadd [#allocation4], 4294965248 }
  0x2c   :  { %892 = dma.done.wait [#allocation7], 1280  }
  0x2d   :  { %893 = vsyncadd [#allocation7], 4294966016  ;;  %v800_v1 = vld [vmem:[#allocation6 + $0x8] sm:$0xff]   ;;  %v801_v2 = vld [vmem:[#allocation6] sm:$0xff]   ;;  %vm118_vm0 = vcmask 261120   ;;  %vm556_vm1 = vcmask 130112  }
  0x2e   :  { %721 = vmatprep.subr.bf16.mxu0 %v800_v1  ;;  %v71_v3 = vld [vmem:[#allocation3] sm:$0xff]  ;;  %v72_v4 = vld [vmem:[#allocation3 + $0x8] sm:$0xff]  ;;  %v73_v6 = vld [vmem:[#allocation3 + $0x10] sm:$0xff]  ;;  %vm563_vm2 = vcmask 195712   ;;  %vm570_vm3 = vcmask 261312   ;;  %vm577_vm4 = vcmask 326912  }
  0x2f   :  { %722 = vmatpush3.bf16.msra.mxu0 %v800_v1  ;;  %v87_v5 = vpack.c.bf16 %v72_v4, %v71_v3  ;;  %v74_v7 = vld [vmem:[#allocation3 + $0x18] sm:$0xff]  ;;  %v75_v8 = vld [vmem:[#allocation3 + $0x20] sm:$0xff]  ;;  %v76_v9 = vld [vmem:[#allocation3 + $0x28] sm:$0xff]  ;;  %vm584_vm5 = vcmask 392512   ;;  %vm591_vm6 = vcmask 458112   ;;  %vm598_vm7 = vcmask 523712  }
  0x30   :  { %723 = vmatprep.subr.bf16.mxu0 %v801_v2  ;;  %v88_v10 = vpack.c.bf16 %v74_v7, %v73_v6  ;;  %v89_v11 = vpack.c.bf16 %v76_v9, %v75_v8  ;;  %v802_v12 = vld [vmem:[#allocation8 + $0x38] sm:$0xff]   ;;  %v77_v13 = vld [vmem:[#allocation3 + $0x30] sm:$0xff]  ;;  %v78_v14 = vld [vmem:[#allocation3 + $0x38] sm:$0xff]  ;;  %vm605_vm8 = vcmask 589312   ;;  %vm612_vm9 = vcmask 654912  }
  0x31   :  { %725 = vmatprep.mubr.msk.bf16.mxu0 %vm118_vm0, %v87_v5  ;;  %v803_v15 = vld [vmem:[#allocation8 + $0x30] sm:$0xff]   ;;  %v80_v17 = vld [vmem:[#allocation3 + $0x48] sm:$0xff]  ;;  %773 = vmatprep.subr.bf16.mxu1 %v802_v12  ;;  %v804_v18 = vld [vmem:[#allocation8 + $0x28] sm:$0xff]   ;;  %v90_v19 = vpack.c.bf16 %v78_v14, %v77_v13  ;;  %vm619_vm10 = vcmask 720512   ;;  %vm626_vm11 = vcmask 786112   ;;  %vm633_vm12 = vcmask 851712  }
  0x32   :  { %v79_v16 = vld [vmem:[#allocation3 + $0x40] sm:$0xff]  ;;  %781 = vmatpush3.bf16.msra.mxu1 %v802_v12  ;;  %v805_v21 = vld [vmem:[#allocation8 + $0x20] sm:$0xff]   ;;  %v82_v23 = vld [vmem:[#allocation3 + $0x58] sm:$0xff]  ;;  %vm640_vm13 = vcmask 917312   ;;  %vm647_vm14 = vcmask 982912   ;;  %vm654_vm15 = vcmask 1048512  }
  0x33   :  { %724 = vmatpush3.bf16.msra.mxu0 %v801_v2  ;;  %774 = vmatprep.subr.bf16.mxu1 %v803_v15  ;;  %v91_v20 = vpack.c.bf16 %v80_v17, %v79_v16  ;;  %v81_v22 = vld [vmem:[#allocation3 + $0x50] sm:$0xff]  ;;  %v83_v24 = vld [vmem:[#allocation3 + $0x60] sm:$0xff]  ;;  %v84_v25 = vld [vmem:[#allocation3 + $0x68] sm:$0xff] }
  0x34   :  { %741 = vmatprep.subr.bf16.mxu0 %v802_v12  ;;  %v806_v26 = vld [vmem:[#allocation8 + $0x18] sm:$0xff]   ;;  %v92_v27 = vpack.c.bf16 %v82_v23, %v81_v22  ;;  %v93_v28 = vpack.c.bf16 %v84_v25, %v83_v24  ;;  %v85_v29 = vld [vmem:[#allocation3 + $0x70] sm:$0xff]  ;;  %v86_v30 = vld [vmem:[#allocation3 + $0x78] sm:$0xff] }
  0x35   :  { %v94_v31 = vpack.c.bf16 %v86_v30, %v85_v29  ;;  %v807_v32 = vld [vmem:[#allocation8 + $0x10] sm:$0xff]   ;;  %v808_v33 = vld [vmem:[#allocation8 + $0x8] sm:$0xff]   ;;  %v809_v34 = vld [vmem:[#allocation8] sm:$0xff]  }
  0x36   :  { %726 = vmatmul.mubr.msk.bf16.vlgmr.msra.gmra.mxu0 %vm118_vm0, %v88_v10  ;;  %782 = vmatpush3.bf16.msra.mxu1 %v803_v15  ;;  %v674_v37 = vld [vmem:[%s1079_s2] ss:$0 sm:$0xff] }
  0x37   :  { %729 = vmatprep.mubr.msk.bf16.mxu0 %vm118_vm0, %v89_v11  ;;  %742 = vmatpush3.bf16.msra.mxu0 %v802_v12  ;;  %v977_v29 = vld [vmem:[%s1081_s4] ss:$0 sm:$0xff]  ;;  %s904_s4 = smov [#allocation9]  }
  0x38   :  { %743 = vmatprep.subr.bf16.mxu0 %v803_v15  ;;  %775 = vmatprep.subr.bf16.mxu1 %v804_v18 }
  0x3a   :  { %783 = vmatpush3.bf16.msra.mxu1 %v804_v18 }
  0x3b   :  { %744 = vmatpush3.bf16.msra.mxu0 %v803_v15  ;;  %776 = vmatprep.subr.bf16.mxu1 %v805_v21 }
  0x3c   :  { %745 = vmatprep.subr.bf16.mxu0 %v804_v18 }
  0x3e   :  { %730 = vmatmul.mubr.msk.bf16.gmra.mxu0 %vm118_vm0, %v90_v19  ;;  %784 = vmatpush3.bf16.msra.mxu1 %v805_v21 }
  0x3f   :  { %733 = vmatprep.mubr.msk.bf16.mxu0 %vm118_vm0, %v91_v20  ;;  %746 = vmatpush3.bf16.msra.mxu0 %v804_v18 }
  0x40   :  { %747 = vmatprep.subr.bf16.mxu0 %v805_v21  ;;  %777 = vmatprep.subr.bf16.mxu1 %v806_v26 }
  0x42   :  { %785 = vmatpush3.bf16.msra.mxu1 %v806_v26 }
  0x43   :  { %748 = vmatpush3.bf16.msra.mxu0 %v805_v21  ;;  %778 = vmatprep.subr.bf16.mxu1 %v807_v32 }
  0x44   :  { %749 = vmatprep.subr.bf16.mxu0 %v806_v26 }
  0x46   :  { %734 = vmatmul.mubr.msk.bf16.gmra.mxu0 %vm118_vm0, %v92_v27  ;;  %786 = vmatpush3.bf16.msra.mxu1 %v807_v32 }
  0x47   :  { %737 = vmatprep.mubr.msk.bf16.mxu0 %vm118_vm0, %v93_v28  ;;  %750 = vmatpush3.bf16.msra.mxu0 %v806_v26  ;;  %v903_v28 = vmov 0  }
  0x48   :  { %751 = vmatprep.subr.bf16.mxu0 %v807_v32  ;;  %779 = vmatprep.subr.bf16.mxu1 %v808_v33 }
  0x49   :  { %798 = vset.pattern.permute.xlu1 %v903_v28  ;;  %799 = vset.pattern.permute.xlu0 %v903_v28 }
  0x4a   :  { %787 = vmatpush3.bf16.msra.mxu1 %v808_v33 }
  0x4b   :  { %752 = vmatpush3.bf16.msra.mxu0 %v807_v32  ;;  %780 = vmatprep.subr.bf16.mxu1 %v809_v34 }
  0x4c   :  { %753 = vmatprep.subr.bf16.mxu0 %v808_v33 }
  0x4e   :  { %738 = vmatmul.mubr.msk.bf16.gmra.mxu0 %vm118_vm0, %v94_v31  ;;  %788 = vmatpush3.bf16.msra.mxu1 %v809_v34 }
  0x4f   :  { %754 = vmatpush3.bf16.msra.mxu0 %v808_v33  ;;  %v983_v33 = vld [vmem:[%s1082_s5] ss:$0 sm:$0xff]  ;;  %s664_s5 = sshll.u32 %s904_s4, 4  ;;  %s665_s5 = int_to_ptr.vmem [resolvable:$true] %s664_s5 }
  0x50   :  { %755 = vmatprep.subr.bf16.mxu0 %v809_v34  ;;  %s870_s24 = scalar_lea.vmem %s665_s5, 16  ;;  %s874_s25 = scalar_lea.vmem %s665_s5, 32 }
  0x51   :  { %p871_p1 = scmp.ne.s32.totalorder %s665_s5, %s870_s24  ;;  %p875_p2 = scmp.lt.s32.totalorder %s665_s5, %s665_s5 }
  0x52   :  { %p876_p3 = scmp.lt.s32.totalorder %s874_s25, %s870_s24 }
  0x53   :  { %756 = vmatpush3.bf16.msra.mxu0 %v809_v34 }
  0x54   :  { %p877_p4 = por %p876_p3, %p875_p2 }
  0x56   :  { %p878_p5 = pnand %p877_p4, %p871_p1 }
  0xf6   :  { %v727_v35 = vpop.f32.mrf.mxu0 }
  0xf7   :  { %v186_v41 = vadd.f32 %v727_v35, %v674_v37 }
  0xf8   :  { %v177_v36 = vpop.f32.mrf.mxu0 }
  0xf9   :  { %v178_v39 = vadd.f32 %v674_v37, %v177_v36  ;;  %v242_v48 = vmax.f32 %v186_v41, 0.0 }
  0xfa   :  { %v728_v38 = vpop.f32.mrf.mxu0 }
  0xfb   :  { %v189_v40 = vadd.f32 %v728_v38, %v674_v37  ;;  %v240_v46 = vmax.f32 %v178_v39, 0.0 }
  0xfc   :  { %v180_v42 = vpop.f32.mrf.mxu0 }
  0xfd   :  { %v181_v43 = vadd.f32 %v674_v37, %v180_v42  ;;  %v243_v44 = vmax.f32 %v189_v40, 0.0 }
  0xfe   :  { %v731_v45 = vpop.f32.mrf.mxu0 }
  0xff   :  { %v241_v47 = vmax.f32 %v181_v43, 0.0  ;;  %v257_v51 = vpack.c.bf16 %v243_v44, %v242_v48  ;;  %v202_v55 = vadd.f32 %v731_v45, %v674_v37 }
 0x100   :  { %v193_v49 = vpop.f32.mrf.mxu0 }
 0x101   :  { %v256_v50 = vpack.c.bf16 %v241_v47, %v240_v46  ;;  %v194_v53 = vadd.f32 %v674_v37, %v193_v49  ;;  %v246_v62 = vmax.f32 %v202_v55, 0.0 }
 0x102   :  { %v732_v52 = vpop.f32.mrf.mxu0 }
 0x103   :  { %v205_v54 = vadd.f32 %v732_v52, %v674_v37  ;;  %757 = vmatprep.mubr.bf16.mxu0 %v256_v50  ;;  %v244_v60 = vmax.f32 %v194_v53, 0.0 }
 0x104   :  { %v196_v56 = vpop.f32.mrf.mxu0  ;;  %758 = vmatmul.mubr.bf16.vlgmr.msra.gmra.mxu0 %v257_v51 }
 0x105   :  { %v197_v57 = vadd.f32 %v674_v37, %v196_v56  ;;  %v247_v58 = vmax.f32 %v205_v54, 0.0 }
 0x106   :  { %v735_v59 = vpop.f32.mrf.mxu0 }
 0x107   :  { %v245_v61 = vmax.f32 %v197_v57, 0.0  ;;  %v218_v63 = vadd.f32 %v735_v59, %v674_v37  ;;  %v259_v3 = vpack.c.bf16 %v247_v58, %v246_v62 }
 0x108   :  { %v209_v0 = vpop.f32.mrf.mxu0 }
 0x109   :  { %v258_v1 = vpack.c.bf16 %v245_v61, %v244_v60  ;;  %v210_v2 = vadd.f32 %v674_v37, %v209_v0  ;;  %v250_v6 = vmax.f32 %v218_v63, 0.0 }
 0x10a   :  { %v736_v4 = vpop.f32.mrf.mxu0 }
 0x10b   :  { %761 = vmatprep.mubr.bf16.mxu1 %v258_v1  ;;  %v221_v5 = vadd.f32 %v736_v4, %v674_v37  ;;  %v248_v8 = vmax.f32 %v210_v2, 0.0 }
 0x10c   :  { %762 = vmatmul.mubr.bf16.vlgmr.msra.gmra.mxu1 %v259_v3  ;;  %v212_v7 = vpop.f32.mrf.mxu0 }
 0x10d   :  { %v251_v9 = vmax.f32 %v221_v5, 0.0  ;;  %v213_v10 = vadd.f32 %v674_v37, %v212_v7 }
 0x10e   :  { %v739_v11 = vpop.f32.mrf.mxu0 }
 0x10f   :  { %v249_v12 = vmax.f32 %v213_v10, 0.0  ;;  %v261_v13 = vpack.c.bf16 %v251_v9, %v250_v6  ;;  %v234_v14 = vadd.f32 %v739_v11, %v674_v37 }
 0x110   :  { %v225_v15 = vpop.f32.mrf.mxu0 }
 0x111   :  { %v260_v16 = vpack.c.bf16 %v249_v12, %v248_v8  ;;  %v226_v17 = vadd.f32 %v674_v37, %v225_v15  ;;  %v254_v20 = vmax.f32 %v234_v14, 0.0 }
 0x112   :  { %v740_v18 = vpop.f32.mrf.mxu0 }
 0x113   :  { %765 = vmatprep.mubr.bf16.mxu1 %v260_v16  ;;  %v237_v19 = vadd.f32 %v740_v18, %v674_v37  ;;  %v252_v22 = vmax.f32 %v226_v17, 0.0 }
 0x114   :  { %766 = vmatmul.mubr.bf16.gmra.mxu1 %v261_v13  ;;  %v228_v21 = vpop.f32.mrf.mxu0 }
 0x115   :  { %v255_v23 = vmax.f32 %v237_v19, 0.0  ;;  %v229_v24 = vadd.f32 %v674_v37, %v228_v21 }
 0x117   :  { %v253_v25 = vmax.f32 %v229_v24, 0.0  ;;  %v263_v26 = vpack.c.bf16 %v255_v23, %v254_v20 }
 0x119   :  { %v262_v27 = vpack.c.bf16 %v253_v25, %v252_v22  ;;  %v503_v22 = vld [vmem:[#allocation2] sm:$0x1] }
 0x11b   :  { %769 = vmatprep.mubr.bf16.mxu1 %v262_v27 }
 0x11c   :  { %770 = vmatmul.mubr.bf16.gmra.mxu1 %v263_v26 }
 0x1c4   :  { %v759_v30 = vpop.f32.mrf.mxu0 }
 0x1c5   :  { %v378_v31 = vadd.f32 %v759_v30, %v977_v29 }
 0x1c6   :  { %v369_v32 = vpop.f32.mrf.mxu0 }
 0x1c7   :  { %v434_v34 = vmax.f32 %v378_v31, 0.0  ;;  %v370_v35 = vadd.f32 %v977_v29, %v369_v32 }
 0x1c8   :  { %v760_v36 = vpop.f32.mrf.mxu0 }
 0x1c9   :  { %v432_v37 = vmax.f32 %v370_v35, 0.0  ;;  %v381_v38 = vadd.f32 %v760_v36, %v977_v29  ;;  %v457_v39 = vmul.f32 %v983_v33, %v434_v34 }
 0x1ca   :  { %v372_v40 = vpop.f32.mrf.mxu0 }
 0x1cb   :  { %v435_v41 = vmax.f32 %v381_v38, 0.0  ;;  %v373_v42 = vadd.f32 %v977_v29, %v372_v40  ;;  %475 = vadd.xlane.f32.xlu1 %v457_v39  ;;  %v455_v43 = vmul.f32 %v983_v33, %v432_v37 }
 0x1cc   :  { %v763_v44 = vpop.f32.mrf.mxu1 }
 0x1cd   :  { %v433_v45 = vmax.f32 %v373_v42, 0.0  ;;  %v394_v46 = vadd.f32 %v763_v44, %v977_v29  ;;  %471 = vadd.xlane.f32.xlu0 %v455_v43  ;;  %v458_v47 = vmul.f32 %v983_v33, %v435_v41 }
 0x1ce   :  { %v385_v48 = vpop.f32.mrf.mxu1 }
 0x1cf   :  { %v438_v49 = vmax.f32 %v394_v46, 0.0  ;;  %v386_v50 = vadd.f32 %v977_v29, %v385_v48  ;;  %477 = vadd.xlane.f32.xlu1 %v458_v47  ;;  %v456_v51 = vmul.f32 %v983_v33, %v433_v45 }
 0x1d0   :  { %v764_v52 = vpop.f32.mrf.mxu1 }
 0x1d1   :  { %473 = vadd.xlane.f32.xlu0 %v456_v51  ;;  %v436_v54 = vmax.f32 %v386_v50, 0.0  ;;  %v397_v55 = vadd.f32 %v764_v52, %v977_v29  ;;  %v461_v57 = vmul.f32 %v983_v33, %v438_v49 }
 0x1d2   :  { %v388_v53 = vpop.f32.mrf.mxu1 }
 0x1d3   :  { %v389_v56 = vadd.f32 %v977_v29, %v388_v53  ;;  %v439_v62 = vmax.f32 %v397_v55, 0.0  ;;  %v459_v0 = vmul.f32 %v983_v33, %v436_v54 }
 0x1d4   :  { %v767_v58 = vpop.f32.mrf.mxu1 }
 0x1d5   :  { %v437_v59 = vmax.f32 %v389_v56, 0.0  ;;  %483 = vadd.xlane.f32.xlu0 %v461_v57  ;;  %v410_v60 = vadd.f32 %v767_v58, %v977_v29  ;;  %v462_v6 = vmul.f32 %v983_v33, %v439_v62 }
 0x1d6   :  { %v401_v61 = vpop.f32.mrf.mxu1 }
 0x1d7   :  { %v460_v63 = vmul.f32 %v983_v33, %v437_v59  ;;  %v442_v2 = vmax.f32 %v410_v60, 0.0  ;;  %v402_v3 = vadd.f32 %v977_v29, %v401_v61 }
 0x1d8   :  { %v768_v1 = vpop.f32.mrf.mxu1 }
 0x1d9   :  { %481 = vadd.xlane.f32.xlu1 %v460_v63  ;;  %479 = vadd.xlane.f32.xlu0 %v459_v0  ;;  %v413_v4 = vadd.f32 %v768_v1, %v977_v29  ;;  %v440_v9 = vmax.f32 %v402_v3, 0.0  ;;  %v465_v10 = vmul.f32 %v983_v33, %v442_v2 }
 0x1da   :  { %v404_v5 = vpop.f32.mrf.mxu1 }
 0x1db   :  { %v443_v7 = vmax.f32 %v413_v4, 0.0  ;;  %v405_v11 = vadd.f32 %v977_v29, %v404_v5  ;;  %v463_v15 = vmul.f32 %v983_v33, %v440_v9 }
 0x1dc   :  { %v771_v8 = vpop.f32.mrf.mxu1 }
 0x1dd   :  { %485 = vadd.xlane.f32.xlu0 %v462_v6  ;;  %v466_v12 = vmul.f32 %v983_v33, %v443_v7  ;;  %v441_v14 = vmax.f32 %v405_v11, 0.0  ;;  %v426_v16 = vadd.f32 %v771_v8, %v977_v29 }
 0x1de   :  { %v417_v13 = vpop.f32.mrf.mxu1 }
 0x1df   :  { %v446_v18 = vmax.f32 %v426_v16, 0.0  ;;  %v464_v19 = vmul.f32 %v983_v33, %v441_v14  ;;  %v418_v20 = vadd.f32 %v977_v29, %v417_v13 }
 0x1e0   :  { %v772_v17 = vpop.f32.mrf.mxu1 }
 0x1e1   :  { %491 = vadd.xlane.f32.xlu0 %v465_v10  ;;  %v444_v23 = vmax.f32 %v418_v20, 0.0  ;;  %v469_v24 = vmul.f32 %v983_v33, %v446_v18  ;;  %v429_v26 = vadd.f32 %v772_v17, %v977_v29 }
 0x1e2   :  { %v420_v21 = vpop.f32.mrf.mxu1 }
 0x1e3   :  { %v421_v25 = vadd.f32 %v977_v29, %v420_v21  ;;  %v467_v28 = vmul.f32 %v983_v33, %v444_v23  ;;  %v447_v30 = vmax.f32 %v429_v26, 0.0  ;;  %v509_v29 = vlaneseq }
 0x1e5   :  { %487 = vadd.xlane.f32.xlu0 %v463_v15  ;;  %v445_v27 = vmax.f32 %v421_v25, 0.0  ;;  %v470_v32 = vmul.f32 %v983_v33, %v447_v30  ;;  %v1016_v42 = vshrl.u32 %v509_v29, 7  ;;  %v1019_v44 = vand.u32 127, %v509_v29 }
 0x1e7   :  { %v468_v31 = vmul.f32 %v983_v33, %v445_v27  ;;  %v511_v43 = vsub.s32 0, %v1016_v42  ;;  %v551_v47 = vadd.s32 4294967288, %v1019_v44  ;;  %v558_v48 = vadd.s32 4294967280, %v1019_v44 }
 0x1e8   :  { %v549_v52 = vsub.s32 %v1019_v44, %v1016_v42  ;;  %v565_v58 = vadd.s32 4294967272, %v1019_v44  ;;  %v572_v61 = vadd.s32 4294967264, %v1019_v44  ;;  %v579_v1 = vadd.s32 4294967256, %v1019_v44 }
 0x1e9   :  { %489 = vadd.xlane.f32.xlu0 %v464_v19  ;;  %v554_v53 = vsub.s32 %v551_v47, %v1016_v42  ;;  %v561_v55 = vsub.s32 %v558_v48, %v1016_v42  ;;  %v586_v7 = vadd.s32 4294967248, %v1019_v44  ;;  %v593_v13 = vadd.s32 4294967240, %v1019_v44 }
 0x1ea   :  { %506 = vperm.xlu1 %798, %v503_v22   ;;  %v568_v0 = vsub.s32 %v565_v58, %v1016_v42  ;;  %v575_v4 = vsub.s32 %v572_v61, %v1016_v42  ;;  %v582_v10 = vsub.s32 %v579_v1, %v1016_v42  ;;  %v600_v16 = vadd.s32 4294967232, %v1019_v44 }
 0x1eb   :  { %v607_v19 = vadd.s32 4294967224, %v1019_v44  ;;  %v596_v21 = vsub.s32 %v593_v13, %v1016_v42  ;;  %v614_v30 = vadd.s32 4294967216, %v1019_v44 }
 0x1ed   :  { %499 = vadd.xlane.f32.xlu0 %v469_v24  ;;  %v603_v24 = vsub.s32 %v600_v16, %v1016_v42  ;;  %v610_v26 = vsub.s32 %v607_v19, %v1016_v42  ;;  %v617_v29 = vsub.s32 %v614_v30, %v1016_v42 }
 0x1f1   :  { %495 = vadd.xlane.f32.xlu0 %v467_v28 }
 0x1f5   :  { %497 = vadd.xlane.f32.xlu0 %v468_v31 }
 0x1f9   :  { %501 = vadd.xlane.f32.xlu0 %v470_v32 }
 0x20e   :  { %493 = vadd.xlane.f32.xlu1 %v466_v12  ;;  %v589_v12 = vsub.s32 %v586_v7, %v1016_v42 }
 0x254   :  { %v476_v37 = vpop.xlane.xlu1 %475 }
 0x256   :  { %v472_v34 = vpop.xlane.xlu0 %471 }
 0x258   :  { %v478_v39 = vpop.xlane.xlu1 %477 }
 0x25a   :  { %v474_v35 = vpop.xlane.xlu0 %473 }
 0x25e   :  { %v484_v36 = vpop.xlane.xlu0 %483 }
 0x262   :  { %v480_v38 = vpop.xlane.xlu0 %479  ;;  %v482_v40 = vpop.xlane.xlu1 %481 }
 0x266   :  { %v486_v41 = vpop.xlane.xlu0 %485  ;;  %v507_v45 = vpop.permute.xlu1 %506 }
 0x267   :  { %v1023_v33 = vrot.slane %v507_v45, %v511_v43  ;;  %v649_v43 = vadd.s32 4294967176, %v1019_v44 }
 0x269   :  { %v513_v50 = vadd.f32 %v1023_v33, %v472_v34  ;;  %v514_v51 = vadd.f32 %v1023_v33, %v474_v35  ;;  %v515_v54 = vadd.f32 %v1023_v33, %v476_v37  ;;  %v516_v62 = vadd.f32 %v1023_v33, %v478_v39 }
 0x26a   :  { %v1021_v46 = vpop.xlane.xlu0 %491  ;;  %v517_v2 = vadd.f32 %v1023_v33, %v480_v38  ;;  %v518_v8 = vadd.f32 %v1023_v33, %v482_v40  ;;  %v519_v14 = vadd.f32 %v1023_v33, %v484_v36  ;;  %v520_v22 = vadd.f32 %v1023_v33, %v486_v41 }
 0x26b   :  { %v550_v56 = vrot.slane %v513_v50, %v549_v52  ;;  %v555_v57 = vrot.slane %v514_v51, %v554_v53  ;;  %v562_v60 = vrot.slane %v515_v54, %v561_v55  ;;  %v569_v6 = vrot.slane %v516_v62, %v568_v0 }
 0x26c   :  { %v576_v11 = vrot.slane %v517_v2, %v575_v4  ;;  %v583_v18 = vrot.slane %v518_v8, %v582_v10  ;;  %v590_v23 = vrot.slane %v519_v14, %v589_v12  ;;  %v597_v32 = vrot.slane %v520_v22, %v596_v21 }
 0x26d   :  { %v557_v63 = vsel %vm556_vm1, %v555_v57, %v550_v56  ;;  %v621_v34 = vadd.s32 4294967208, %v1019_v44  ;;  %v628_v36 = vadd.s32 4294967200, %v1019_v44  ;;  %v635_v39 = vadd.s32 4294967192, %v1019_v44 }
 0x26e   :  { %v488_v49 = vpop.xlane.xlu0 %487  ;;  %v564_v3 = vsel %vm563_vm2, %v562_v60, %v557_v63  ;;  %v523_v40 = vadd.f32 %v1023_v33, %v1021_v46  ;;  %v642_v41 = vadd.s32 4294967184, %v1019_v44  ;;  %v652_v57 = vsub.s32 %v649_v43, %v1016_v42 }
 0x26f   :  { %v571_v9 = vsel %vm570_vm3, %v569_v6, %v564_v3  ;;  %v521_v25 = vadd.f32 %v1023_v33, %v488_v49  ;;  %v624_v45 = vsub.s32 %v621_v34, %v1016_v42  ;;  %v631_v48 = vsub.s32 %v628_v36, %v1016_v42 }
 0x270   :  { %v578_v15 = vsel %vm577_vm4, %v576_v11, %v571_v9  ;;  %v638_v53 = vsub.s32 %v635_v39, %v1016_v42  ;;  %v618_v55 = vrot.slane %v523_v40, %v617_v29  ;;  %v645_v44 = vsub.s32 %v642_v41, %v1016_v42 }
 0x271   :  { %v585_v20 = vsel %vm584_vm5, %v583_v18, %v578_v15  ;;  %v604_v35 = vrot.slane %v521_v25, %v603_v24 }
 0x272   :  { %v490_v59 = vpop.xlane.xlu0 %489  ;;  %v592_v28 = vsel %vm591_vm6, %v590_v23, %v585_v20 }
 0x273   :  { %v522_v27 = vadd.f32 %v1023_v33, %v490_v59  ;;  %v599_v37 = vsel %vm598_vm7, %v597_v32, %v592_v28 }
 0x274   :  { %v606_v47 = vsel %vm605_vm8, %v604_v35, %v599_v37 }
 0x275   :  { %v611_v38 = vrot.slane %v522_v27, %v610_v26 }
 0x276   :  { %v500_v5 = vpop.xlane.xlu0 %499 }
 0x277   :  { %v613_v52 = vsel %vm612_vm9, %v611_v38, %v606_v47  ;;  %v527_v56 = vadd.f32 %v1023_v33, %v500_v5 }
 0x278   :  { %v620_v61 = vsel %vm619_vm10, %v618_v55, %v613_v52 }
 0x279   :  { %v646_v0 = vrot.slane %v527_v56, %v645_v44 }
 0x27a   :  { %v496_v17 = vpop.xlane.xlu0 %495 }
 0x27b   :  { %v525_v49 = vadd.f32 %v1023_v33, %v496_v17 }
 0x27d   :  { %v632_v60 = vrot.slane %v525_v49, %v631_v48 }
 0x27e   :  { %v498_v31 = vpop.xlane.xlu0 %497 }
 0x27f   :  { %v526_v46 = vadd.f32 %v1023_v33, %v498_v31 }
 0x281   :  { %v639_v62 = vrot.slane %v526_v46, %v638_v53 }
 0x282   :  { %v502_v50 = vpop.xlane.xlu0 %501 }
 0x283   :  { %v528_v58 = vadd.f32 %v1023_v33, %v502_v50 }
 0x285   :  { %v653_v2 = vrot.slane %v528_v58, %v652_v57 }
 0x297   :  { %v494_v51 = vpop.xlane.xlu1 %493 }
 0x298   :  { %v524_v54 = vadd.f32 %v1023_v33, %v494_v51 }
 0x29a   :  { %v625_v59 = vrot.slane %v524_v54, %v624_v45 }
 0x29c   :  { %v627_v63 = vsel %vm626_vm11, %v625_v59, %v620_v61 }
 0x29d   :  { %v634_v1 = vsel %vm633_vm12, %v632_v60, %v627_v63 }
 0x29e   :  { %v641_v3 = vsel %vm640_vm13, %v639_v62, %v634_v1 }
 0x29f   :  { %v648_v4 = vsel %vm647_vm14, %v646_v0, %v641_v3 }
 0x2a0   :  { %v655_v42 = vsel %vm654_vm15, %v653_v2, %v648_v4 }
 0x2a1   :  { %657 = vst [vmem:[#allocation9] sm:$0x1] %v655_v42 }
 0x2a2   :  { %881 = shalt.err (!%p878_p5)
}
 0x2a3   :  { %667 = dma.vmem_to_hbm [thread:$0]  %s665_s5, 16, %s1084_s7, [#allocation5]  }
 0x2a4   :  { %894 = dma.done.wait [#allocation5], 16  }
 0x2a5   :  { %895 = vsyncadd [#allocation5], 4294967280 }
 0x2a6   :  { %671 = vsyncpa [#allocation4], 1 }
 0x2a7   :  { %672 = vsyncpa [#allocation7], 1 }
 0x2a8   :  { %673 = vsyncpa [#allocation5], 1 }

</bundles_post_ra>
